<compile_context>
chip_gen: v7x
topology: tpu7x:2x2x1
jax: 0.10.0
libtpu: 0.0.40
codegen_flags: <defaults>
</compile_context>

<pallas_src>
import jax
import jax.numpy as jnp
from jax.experimental import pallas as pl
from jax.experimental.pallas import tpu as pltpu

# ----------------------------- model hyper-params -----------------------------
C_IN = 4            # input channels
C_OUT = 32          # backbone.out_channels
H = W = 16          # spatial size
KH = KW = 3         # conv kernel
NUM_CLASSES = 10    # classifier output dim
BATCH = 2

K_RAW = KH * KW * C_IN      # 36 (im2col contraction dim)
K_PAD = 128                 # lane-dense contraction dim
N_PAD = 128                 # lane-dense channel / class dim


# -------------------------------- wrapper --------------------------------------
@jax.jit
def validation_classifier(x_nchw, w_conv, b_conv, w_cls, b_cls):
    """x_nchw: (B, Cin, H, W) f32 -> logits (B, NUM_CLASSES) f32."""
    B = x_nchw.shape[0]
    M = B * H * W

    # ---- plain-JAX glue: layout + im2col + lane-dense padding (fused by XLA) ----
    x_nhwc = jnp.transpose(x_nchw, (0, 2, 3, 1))                       # (B,H,W,Cin)
    x_pad = jnp.pad(x_nhwc, ((0, 0), (1, 1), (1, 1), (0, 0)))          # (B,H+2,W+2,Cin)
    taps = [x_pad[:, kh:kh + H, kw:kw + W, :]
            for kh in range(KH) for kw in range(KW)]                   # 9 x (B,H,W,Cin)
    patches = jnp.stack(taps, axis=3).reshape(M, K_RAW)                # (M, 36)
    patches = jnp.pad(patches, ((0, 0), (0, K_PAD - K_RAW)))           # (M, 128)
    patches = patches.astype(jnp.bfloat16)

    # Conv weight as im2col matrix, zero-padded to (128, 128); zero pads are exact.
    w1 = w_conv.reshape(K_RAW, C_OUT)
    w1 = jnp.pad(w1, ((0, K_PAD - K_RAW), (0, N_PAD - C_OUT))).astype(jnp.bfloat16)
    b1 = jnp.pad(b_conv.reshape(1, C_OUT), ((0, 0), (0, N_PAD - C_OUT)))        # f32

    w2 = jnp.pad(w_cls, ((0, N_PAD - C_OUT), (0, N_PAD - NUM_CLASSES)))
    w2 = w2.astype(jnp.bfloat16)                                                 # (128,128)
    b2 = jnp.pad(b_cls.reshape(1, NUM_CLASSES), ((0, 0), (0, N_PAD - NUM_CLASSES)))  # f32

    # ------------------------------ Pallas kernel -------------------------------
    def kernel(p_ref, w1_ref, b1_ref, w2_ref, b2_ref, out_ref):
        # conv as one im2col matmul on the MXU: (M,128)bf16 @ (128,128)bf16 -> f32
        acc = jnp.dot(p_ref[...], w1_ref[...], preferred_element_type=jnp.float32)
        # bias + ReLU in f32 (lanes >= C_OUT stay exactly zero)
        acc = jnp.maximum(acc + b1_ref[...], 0.0)                      # (M, 128)
        # global average pool per image
        feat = jnp.sum(acc.reshape(B, H * W, N_PAD), axis=1) * (1.0 / (H * W))   # (B,128)
        # classifier matmul (padded weight columns keep lanes 10..127 at zero)
        logits = jnp.dot(feat.astype(jnp.bfloat16), w2_ref[...],
                         preferred_element_type=jnp.float32) + b2_ref[...]
        out_ref[...] = logits.astype(out_ref.dtype)                    # (B, 128)

    out_padded = pl.pallas_call(
        kernel,
        out_shape=jax.ShapeDtypeStruct((B, N_PAD), jnp.float32),
        grid_spec=pltpu.PrefetchScalarGridSpec(
            num_scalar_prefetch=0,
            grid=(1,),
            in_specs=[
                pl.BlockSpec((M, K_PAD), lambda i: (0, 0)),       # patches
                pl.BlockSpec((K_PAD, N_PAD), lambda i: (0, 0)),   # conv weight (im2col)
                pl.BlockSpec((1, N_PAD), lambda i: (0, 0)),       # conv bias
                pl.BlockSpec((N_PAD, N_PAD), lambda i: (0, 0)),   # classifier weight
                pl.BlockSpec((1, N_PAD), lambda i: (0, 0)),       # classifier bias
            ],
            out_specs=pl.BlockSpec((B, N_PAD), lambda i: (0, 0)),
        ),
        compiler_params=pltpu.CompilerParams(
            dimension_semantics=("arbitrary",)),
    )(patches, w1, b1, w2, b2)

    return out_padded[:, :NUM_CLASSES]


# --------------------------- pure-JAX reference ---------------------------------
def _reference(x_nchw, w_conv, b_conv, w_cls, b_cls):
    x_nhwc = jnp.transpose(x_nchw, (0, 2, 3, 1))
    y = jax.lax.conv_general_dilated(
        x_nhwc, w_conv, window_strides=(1, 1), padding="SAME",
        dimension_numbers=("NHWC", "HWIO", "NHWC"))
    y = jnp.maximum(y + b_conv.reshape(1, 1, 1, -1), 0.0)
    feat = jnp.mean(y, axis=(1, 2))               # (B, Cout)
    return feat @ w_cls + b_cls.reshape(1, -1)    # (B, NUM_CLASSES)


# ----------------------------------- main ---------------------------------------
if __name__ == "__main__":
    key = jax.random.PRNGKey(0)
    kx, kw1, kb1, kw2, kb2 = jax.random.split(key, 5)

    x = jax.random.normal(kx, (BATCH, C_IN, H, W), dtype=jnp.float32)

    # Deterministic synthetic parameters (no checkpoint).
    w_conv = 0.1 * jax.random.normal(kw1, (KH, KW, C_IN, C_OUT), dtype=jnp.float32)
    b_conv = 0.01 * jax.random.normal(kb1, (1, C_OUT), dtype=jnp.float32)
    w_cls = 0.1 * jax.random.normal(kw2, (C_OUT, NUM_CLASSES), dtype=jnp.float32)
    b_cls = 0.01 * jax.random.normal(kb2, (1, NUM_CLASSES), dtype=jnp.float32)

    logits = validation_classifier(x, w_conv, b_conv, w_cls, b_cls)
    jax.block_until_ready(logits)

    ref = _reference(x, w_conv, b_conv, w_cls, b_cls)
    assert logits.shape == (BATCH, NUM_CLASSES)
    # bf16 MXU operands with f32 accumulation -> relaxed tolerance vs f32 reference.
    assert jnp.allclose(logits, ref, atol=2e-2, rtol=2e-2), "mismatch vs reference"

    print("KERNEL_OK")
</pallas_src>

<mosaic_0001>
module attributes {stable_mosaic.version = 11 : i64} {
  func.func @kernel(%arg0: i32, %arg1: memref<512x128xbf16, #tpu.memory_space<vmem>>, %arg2: memref<128x128xbf16, #tpu.memory_space<vmem>>, %arg3: memref<1x128xf32, #tpu.memory_space<vmem>>, %arg4: memref<128x128xbf16, #tpu.memory_space<vmem>>, %arg5: memref<1x128xf32, #tpu.memory_space<vmem>>, %arg6: memref<2x128xf32, #tpu.memory_space<vmem>>) attributes {dimension_semantics = [#tpu.dimension_semantics<arbitrary>], iteration_bounds = array<i64: 1>, scalar_prefetch = 0 : i64, scratch_operands = 0 : i64, tpu.core_type = #tpu.core_type<tc>, window_params = [{pipeline_mode = #tpu.pipeline_mode<synchronous>, transform_indices = @transform_0, window_bounds = array<i64: 512, 128>}, {pipeline_mode = #tpu.pipeline_mode<synchronous>, transform_indices = @transform_1, window_bounds = array<i64: 128, 128>}, {pipeline_mode = #tpu.pipeline_mode<synchronous>, transform_indices = @transform_2, window_bounds = array<i64: 1, 128>}, {pipeline_mode = #tpu.pipeline_mode<synchronous>, transform_indices = @transform_3, window_bounds = array<i64: 128, 128>}, {pipeline_mode = #tpu.pipeline_mode<synchronous>, transform_indices = @transform_4, window_bounds = array<i64: 1, 128>}, {pipeline_mode = #tpu.pipeline_mode<synchronous>, transform_indices = @transform_5, window_bounds = array<i64: 2, 128>}]} {
    %c0 = arith.constant 0 : index
    %c0_0 = arith.constant 0 : index
    %0 = vector.load %arg1[%c0, %c0_0] : memref<512x128xbf16, #tpu.memory_space<vmem>>, vector<512x128xbf16>
    %c0_1 = arith.constant 0 : index
    %c0_2 = arith.constant 0 : index
    %1 = vector.load %arg2[%c0_1, %c0_2] : memref<128x128xbf16, #tpu.memory_space<vmem>>, vector<128x128xbf16>
    %cst = arith.constant dense<0.000000e+00> : vector<512x128xf32>
    %2 = tpu.matmul %0, %1, %cst {dimension_numbers = #tpu.dot_dimension_numbers<[1], [0], [0], [1], [0, 0, 1, 1], [], []>} : vector<512x128xbf16>, vector<128x128xbf16>, vector<512x128xf32> -> vector<512x128xf32>
    %c0_3 = arith.constant 0 : index
    %c0_4 = arith.constant 0 : index
    %3 = vector.load %arg3[%c0_3, %c0_4] : memref<1x128xf32, #tpu.memory_space<vmem>>, vector<1x128xf32>
    %4 = vector.broadcast %3 : vector<1x128xf32> to vector<512x128xf32>
    %5 = arith.addf %2, %4 : vector<512x128xf32>
    %cst_5 = arith.constant 0.000000e+00 : f32
    %6 = vector.broadcast %cst_5 : f32 to vector<512x128xf32>
    %7 = arith.maximumf %5, %6 : vector<512x128xf32>
    %8 = vector.shape_cast %7 : vector<512x128xf32> to vector<2x256x128xf32>
    %cst_6 = arith.constant dense<0.000000e+00> : vector<2x128xf32>
    %9 = vector.multi_reduction <add>, %8, %cst_6 [1] : vector<2x256x128xf32> to vector<2x128xf32>
    %cst_7 = arith.constant 3.906250e-03 : f32
    %10 = vector.broadcast %cst_7 : f32 to vector<2x128xf32>
    %11 = arith.mulf %9, %10 : vector<2x128xf32>
    %12 = arith.truncf %11 : vector<2x128xf32> to vector<2x128xbf16>
    %c0_8 = arith.constant 0 : index
    %c0_9 = arith.constant 0 : index
    %13 = vector.load %arg4[%c0_8, %c0_9] : memref<128x128xbf16, #tpu.memory_space<vmem>>, vector<128x128xbf16>
    %cst_10 = arith.constant dense<0.000000e+00> : vector<2x128xf32>
    %14 = tpu.matmul %12, %13, %cst_10 {dimension_numbers = #tpu.dot_dimension_numbers<[1], [0], [0], [1], [0, 0, 1, 1], [], []>} : vector<2x128xbf16>, vector<128x128xbf16>, vector<2x128xf32> -> vector<2x128xf32>
    %c0_11 = arith.constant 0 : index
    %c0_12 = arith.constant 0 : index
    %15 = vector.load %arg5[%c0_11, %c0_12] : memref<1x128xf32, #tpu.memory_space<vmem>>, vector<1x128xf32>
    %16 = vector.broadcast %15 : vector<1x128xf32> to vector<2x128xf32>
    %17 = arith.addf %14, %16 : vector<2x128xf32>
    %c0_13 = arith.constant 0 : index
    %c0_14 = arith.constant 0 : index
    %18 = vector.load %arg6[%c0_13, %c0_14] : memref<2x128xf32, #tpu.memory_space<vmem>>, vector<2x128xf32>
    tpu.vector_store %arg6[%c0_13, %c0_14], %17 {strides = array<i32>} : memref<2x128xf32, #tpu.memory_space<vmem>>, vector<2x128xf32>,
    return
  }
  func.func @transform_0(%arg0: i32) -> (i32, i32) {
    %c0_i32 = arith.constant 0 : i32
    %c0_i32_0 = arith.constant 0 : i32
    %c0_i32_1 = arith.constant 0 : i32
    return %c0_i32, %c0_i32_0 : i32, i32
  }
  func.func @transform_1(%arg0: i32) -> (i32, i32) {
    %c0_i32 = arith.constant 0 : i32
    %c0_i32_0 = arith.constant 0 : i32
    %c0_i32_1 = arith.constant 0 : i32
    return %c0_i32, %c0_i32_0 : i32, i32
  }
  func.func @transform_2(%arg0: i32) -> (i32, i32) {
    %c0_i32 = arith.constant 0 : i32
    %c0_i32_0 = arith.constant 0 : i32
    %c0_i32_1 = arith.constant 0 : i32
    return %c0_i32, %c0_i32_0 : i32, i32
  }
  func.func @transform_3(%arg0: i32) -> (i32, i32) {
    %c0_i32 = arith.constant 0 : i32
    %c0_i32_0 = arith.constant 0 : i32
    %c0_i32_1 = arith.constant 0 : i32
    return %c0_i32, %c0_i32_0 : i32, i32
  }
  func.func @transform_4(%arg0: i32) -> (i32, i32) {
    %c0_i32 = arith.constant 0 : i32
    %c0_i32_0 = arith.constant 0 : i32
    %c0_i32_1 = arith.constant 0 : i32
    return %c0_i32, %c0_i32_0 : i32, i32
  }
  func.func @transform_5(%arg0: i32) -> (i32, i32) {
    %c0_i32 = arith.constant 0 : i32
    %c0_i32_0 = arith.constant 0 : i32
    %c0_i32_1 = arith.constant 0 : i32
    return %c0_i32, %c0_i32_0 : i32, i32
  }
}

</mosaic_0001>

<bundles_post_ra>
// kernel: validation_classifier.1
= control target key start
LH: loop header
LB: loop body
LE: loop exit
PB: predicated region body
PF: predicated region fallthrough
CT: control target
= control target key end

     0   :  { %s1562_s0 = inlined_call_operand.vmem [shape: bf16[512,128], index: 0, kind: input, shape index: {}]   ;;  %s1563_s1 = inlined_call_operand.vmem [shape: bf16[128,128], index: 1, kind: input, shape index: {}]   ;;  %s1564_s2 = inlined_call_operand.vmem [shape: f32[1,128], index: 2, kind: input, shape index: {}]   ;;  %s1565_s3 = inlined_call_operand.vmem [shape: bf16[128,128], index: 3, kind: input, shape index: {}]   ;;  %s1566_s4 = inlined_call_operand.vmem [shape: f32[1,128], index: 4, kind: input, shape index: {}]   ;;  %s1567_s5 = inlined_call_operand.hbm [shape: f32[2,128], index: 5, kind: output, shape index: {}]  }
   0x1   :  { %v1132_v0 = vld [vmem:[%s1563_s1] sm:$0xff]   ;;  %v1133_v1 = vld [vmem:[%s1563_s1 + $0x8] sm:$0xff]   ;;  %v1134_v2 = vld [vmem:[%s1563_s1 + $0x10] sm:$0xff]  }
   0x2   :  { %1013 = vmatprep.subr.bf16.mxu0 %v1132_v0  ;;  %1113 = vmatprep.subr.bf16.mxu1 %v1132_v0  ;;  %v1135_v3 = vld [vmem:[%s1563_s1 + $0x18] sm:$0xff]   ;;  %v1140_v4 = vld [vmem:[%s1562_s0] sm:$0xff]   ;;  %v1137_v6 = vld [vmem:[%s1563_s1 + $0x28] sm:$0xff]  }
   0x3   :  { %1014 = vmatpush3.bf16.msra.mxu0 %v1132_v0  ;;  %1121 = vmatpush3.bf16.msra.mxu1 %v1132_v0  ;;  %v1136_v5 = vld [vmem:[%s1563_s1 + $0x20] sm:$0xff]   ;;  %v1138_v7 = vld [vmem:[%s1563_s1 + $0x30] sm:$0xff]   ;;  %v1139_v8 = vld [vmem:[%s1563_s1 + $0x38] sm:$0xff]  }
   0x4   :  { %1015 = vmatprep.subr.bf16.mxu0 %v1133_v1  ;;  %1114 = vmatprep.subr.bf16.mxu1 %v1133_v1  ;;  %v1158_v9 = vld [vmem:[%s1562_s0 + $0x90] sm:$0xff]   ;;  %v1141_v10 = vld [vmem:[%s1562_s0 + $0x8] sm:$0xff]   ;;  %v1159_v12 = vld [vmem:[%s1562_s0 + $0x98] sm:$0xff]  }
   0x5   :  { %1029 = vmatprep.mubr.bf16.mxu0 %v1140_v4  ;;  %v1142_v11 = vld [vmem:[%s1562_s0 + $0x10] sm:$0xff]   ;;  %1065 = vmatprep.mubr.bf16.mxu1 %v1158_v9  ;;  %v1160_v13 = vld [vmem:[%s1562_s0 + $0xa0] sm:$0xff]   ;;  %v1143_v14 = vld [vmem:[%s1562_s0 + $0x18] sm:$0xff]  }
   0x6   :  { %v1144_v15 = vld [vmem:[%s1562_s0 + $0x20] sm:$0xff]   ;;  %v1161_v16 = vld [vmem:[%s1562_s0 + $0xa8] sm:$0xff]   ;;  %v1162_v17 = vld [vmem:[%s1562_s0 + $0xb0] sm:$0xff]  }
   0x7   :  { %1016 = vmatpush3.bf16.msra.mxu0 %v1133_v1  ;;  %1122 = vmatpush3.bf16.msra.mxu1 %v1133_v1 }
   0x8   :  { %1017 = vmatprep.subr.bf16.mxu0 %v1134_v2  ;;  %1115 = vmatprep.subr.bf16.mxu1 %v1134_v2 }
   0xb   :  { %1018 = vmatpush3.bf16.msra.mxu0 %v1134_v2  ;;  %1123 = vmatpush3.bf16.msra.mxu1 %v1134_v2 }
   0xc   :  { %1019 = vmatprep.subr.bf16.mxu0 %v1135_v3  ;;  %1116 = vmatprep.subr.bf16.mxu1 %v1135_v3 }
   0xf   :  { %1020 = vmatpush3.bf16.msra.mxu0 %v1135_v3  ;;  %1124 = vmatpush3.bf16.msra.mxu1 %v1135_v3 }
  0x10   :  { %1021 = vmatprep.subr.bf16.mxu0 %v1136_v5  ;;  %1117 = vmatprep.subr.bf16.mxu1 %v1136_v5 }
  0x13   :  { %1022 = vmatpush3.bf16.msra.mxu0 %v1136_v5  ;;  %1125 = vmatpush3.bf16.msra.mxu1 %v1136_v5 }
  0x14   :  { %1023 = vmatprep.subr.bf16.mxu0 %v1137_v6  ;;  %1118 = vmatprep.subr.bf16.mxu1 %v1137_v6 }
  0x17   :  { %1024 = vmatpush3.bf16.msra.mxu0 %v1137_v6  ;;  %1126 = vmatpush3.bf16.msra.mxu1 %v1137_v6 }
  0x18   :  { %1025 = vmatprep.subr.bf16.mxu0 %v1138_v7  ;;  %1119 = vmatprep.subr.bf16.mxu1 %v1138_v7 }
  0x1b   :  { %1026 = vmatpush3.bf16.msra.mxu0 %v1138_v7  ;;  %1127 = vmatpush3.bf16.msra.mxu1 %v1138_v7 }
  0x1c   :  { %1027 = vmatprep.subr.bf16.mxu0 %v1139_v8  ;;  %1120 = vmatprep.subr.bf16.mxu1 %v1139_v8 }
  0x1f   :  { %1028 = vmatpush3.bf16.msra.mxu0 %v1139_v8  ;;  %1128 = vmatpush3.bf16.msra.mxu1 %v1139_v8 }
  0x22   :  { %1030 = vmatmul.mubr.bf16.vlgmr.msra.gmra.mrb[0].mxu0 %v1141_v10  ;;  %1066 = vmatmul.mubr.bf16.vlgmr.msra.gmra.mrb[0].mxu1 %v1159_v12 }
  0x23   :  { %1033 = vmatprep.mubr.bf16.mxu0 %v1142_v11  ;;  %1069 = vmatprep.mubr.bf16.mxu1 %v1160_v13 }
  0x2a   :  { %1034 = vmatmul.mubr.bf16.gmra.mrb[4].mxu0 %v1143_v14  ;;  %1070 = vmatmul.mubr.bf16.gmra.mrb[4].mxu1 %v1161_v16 }
  0x2b   :  { %1037 = vmatprep.mubr.bf16.mxu0 %v1144_v15  ;;  %1073 = vmatprep.mubr.bf16.mxu1 %v1162_v17 }
  0x2c   :  { %10 = vsyncpa [#allocation3], 0  ;;  %v1145_v18 = vld [vmem:[%s1562_s0 + $0x28] sm:$0xff]   ;;  %v1163_v19 = vld [vmem:[%s1562_s0 + $0xb8] sm:$0xff]   ;;  %v1204_v41 = vmov 0.0   ;;  %vm1205_vm0 = vmmov 0  }
  0x2d   :  { %v1146_v20 = vld [vmem:[%s1562_s0 + $0x30] sm:$0xff]   ;;  %v1164_v21 = vld [vmem:[%s1562_s0 + $0xc0] sm:$0xff]   ;;  %v1147_v22 = vld [vmem:[%s1562_s0 + $0x38] sm:$0xff]   ;;  %1093 = vmatprep.subr.bf16.mxu1 %v1204_v41  ;;  %vm807_vm1 = vcmask 1041409   ;;  %s1206_s12 = smov [#allocation2]  }
  0x2e   :  { %v1165_v23 = vld [vmem:[%s1562_s0 + $0xc8] sm:$0xff]   ;;  %v1148_v24 = vld [vmem:[%s1562_s0 + $0x40] sm:$0xff]   ;;  %v1166_v25 = vld [vmem:[%s1562_s0 + $0xd0] sm:$0xff]   ;;  %s906_s13 = sshll.u32 %s1206_s12, 4  ;;  %s907_s13 = int_to_ptr.vmem [resolvable:$true] %s906_s13 }
  0x2f   :  { %v1149_v26 = vld [vmem:[%s1562_s0 + $0x48] sm:$0xff]   ;;  %v1167_v27 = vld [vmem:[%s1562_s0 + $0xd8] sm:$0xff]   ;;  %v1150_v28 = vld [vmem:[%s1562_s0 + $0x50] sm:$0xff]   ;;  %s1180_s14 = scalar_lea.vmem %s907_s13, 32  ;;  %p1185_p1 = scmp.lt.s32.totalorder %s907_s13, %s907_s13 }
  0x30   :  { %v1168_v29 = vld [vmem:[%s1562_s0 + $0xe0] sm:$0xff]   ;;  %v1151_v30 = vld [vmem:[%s1562_s0 + $0x58] sm:$0xff]   ;;  %v1169_v31 = vld [vmem:[%s1562_s0 + $0xe8] sm:$0xff]   ;;  %p1181_p0 = scmp.ne.s32.totalorder %s907_s13, %s1180_s14  ;;  %p1186_p2 = scmp.lt.s32.totalorder %s1180_s14, %s1180_s14 }
  0x31   :  { %v1152_v32 = vld [vmem:[%s1562_s0 + $0x60] sm:$0xff]   ;;  %v1170_v33 = vld [vmem:[%s1562_s0 + $0xf0] sm:$0xff]   ;;  %v1153_v34 = vld [vmem:[%s1562_s0 + $0x68] sm:$0xff]  }
  0x32   :  { %1038 = vmatmul.mubr.bf16.gmra.mrb[8].mxu0 %v1145_v18  ;;  %1074 = vmatmul.mubr.bf16.gmra.mrb[8].mxu1 %v1163_v19  ;;  %v1171_v35 = vld [vmem:[%s1562_s0 + $0xf8] sm:$0xff]   ;;  %v1154_v36 = vld [vmem:[%s1562_s0 + $0x70] sm:$0xff]   ;;  %v1156_v38 = vld [vmem:[%s1562_s0 + $0x80] sm:$0xff]   ;;  %p1187_p3 = por %p1186_p2, %p1185_p1 }
  0x33   :  { %1041 = vmatprep.mubr.bf16.mxu0 %v1146_v20  ;;  %1077 = vmatprep.mubr.bf16.mxu1 %v1164_v21  ;;  %v1155_v37 = vld [vmem:[%s1562_s0 + $0x78] sm:$0xff]   ;;  %v1157_v39 = vld [vmem:[%s1562_s0 + $0x88] sm:$0xff]   ;;  %v1172_v40 = vld [vmem:[%s1565_s3] sm:$0xff]  }
  0x34   :  { %1094 = vmatpush3.bf16.msra.mxu1 %v1172_v40  ;;  %v1173_v42 = vld [vmem:[%s1565_s3 + $0x8] sm:$0xff]   ;;  %v1174_v43 = vld [vmem:[%s1565_s3 + $0x10] sm:$0xff]   ;;  %v1373_v44 = vld [vmem:[%s1564_s2] ss:$0 sm:$0xff]  ;;  %p1188_p4 = pnand %p1187_p3, %p1181_p0 }
  0x35   :  { %1095 = vmatprep.subr.bf16.mxu1 %v1204_v41  ;;  %v1175_v59 = vld [vmem:[%s1565_s3 + $0x18] sm:$0xff]   ;;  %v1176_v7 = vld [vmem:[%s1565_s3 + $0x20] sm:$0xff]   ;;  %v1177_v17 = vld [vmem:[%s1565_s3 + $0x28] sm:$0xff]  }
  0x38   :  { %1096 = vmatpush3.bf16.msra.mxu1 %v1173_v42 }
  0x39   :  { %1097 = vmatprep.subr.bf16.mxu1 %v1204_v41 }
  0x3a   :  { %1042 = vmatmul.mubr.bf16.gmra.mrb[12].mxu0 %v1147_v22  ;;  %1078 = vmatmul.mubr.bf16.gmra.mrb[12].mxu1 %v1165_v23 }
  0x3b   :  { %1045 = vmatprep.mubr.bf16.mxu0 %v1148_v24  ;;  %1081 = vmatprep.mubr.bf16.mxu1 %v1166_v25 }
  0x3c   :  { %1098 = vmatpush3.bf16.msra.mxu1 %v1174_v43 }
  0x3d   :  { %1099 = vmatprep.subr.bf16.mxu1 %v1204_v41 }
  0x40   :  { %1100 = vmatpush3.bf16.msra.mxu1 %v1175_v59 }
  0x41   :  { %1101 = vmatprep.subr.bf16.mxu1 %v1204_v41 }
  0x42   :  { %1046 = vmatmul.mubr.bf16.gmra.mrb[16].mxu0 %v1149_v26  ;;  %1082 = vmatmul.mubr.bf16.gmra.mrb[16].mxu1 %v1167_v27 }
  0x43   :  { %1049 = vmatprep.mubr.bf16.mxu0 %v1150_v28  ;;  %1085 = vmatprep.mubr.bf16.mxu1 %v1168_v29  ;;  %v1178_v29 = vld [vmem:[%s1565_s3 + $0x30] sm:$0xff]  }
  0x44   :  { %1102 = vmatpush3.bf16.msra.mxu1 %v1176_v7 }
  0x45   :  { %1103 = vmatprep.subr.bf16.mxu1 %v1204_v41 }
  0x48   :  { %1104 = vmatpush3.bf16.msra.mxu1 %v1177_v17 }
  0x49   :  { %1105 = vmatprep.subr.bf16.mxu1 %v1204_v41 }
  0x4a   :  { %1050 = vmatmul.mubr.bf16.gmra.mrb[20].mxu0 %v1151_v30  ;;  %1086 = vmatmul.mubr.bf16.gmra.mrb[20].mxu1 %v1169_v31 }
  0x4b   :  { %1053 = vmatprep.mubr.bf16.mxu0 %v1152_v32  ;;  %1089 = vmatprep.mubr.bf16.mxu1 %v1170_v33 }
  0x4c   :  { %1106 = vmatpush3.bf16.msra.mxu1 %v1178_v29 }
  0x4d   :  { %1107 = vmatprep.subr.bf16.mxu1 %v1204_v41 }
  0x52   :  { %1054 = vmatmul.mubr.bf16.gmra.mrb[24].mxu0 %v1153_v34  ;;  %1090 = vmatmul.mubr.bf16.gmra.mrb[24].mxu1 %v1171_v35 }
  0x53   :  { %1057 = vmatprep.mubr.bf16.mxu0 %v1154_v36  ;;  %1109 = vmatprep.mubr.msk.bf16.mxu1 %vm1205_vm0, %v1204_v41 }
  0x5a   :  { %1058 = vmatmul.mubr.bf16.gmra.mrb[28].mxu0 %v1155_v37 }
  0x5b   :  { %1061 = vmatprep.mubr.bf16.mxu0 %v1156_v38 }
  0x62   :  { %1062 = vmatmul.mubr.bf16.gmra.mrb[32].mxu0 %v1157_v39  ;;  %v1179_v39 = vld [vmem:[%s1565_s3 + $0x38] sm:$0xff]  }
  0x63   :  { %1108 = vmatpush3.bf16.msra.mxu1 %v1179_v39 }
  0xf5   :  { %v1031_v45 = vpop.f32.mrb[0].mxu0  ;;  %v1375_v46 = vpop.f32.mrb[0].mxu1 }
  0xf6   :  { %v383_v47 = vpop.f32.mrb[1].mxu0  ;;  %v1377_v48 = vpop.f32.mrb[1].mxu1  ;;  %v392_v54 = vadd.f32 %v1031_v45, %v1373_v44 }
  0xf7   :  { %v384_v49 = vadd.f32 %v1373_v44, %v383_v47  ;;  %v1032_v50 = vpop.f32.mrb[2].mxu0  ;;  %v1380_v51 = vpop.f32.mrb[2].mxu1 }
  0xf8   :  { %v386_v52 = vpop.f32.mrb[3].mxu0  ;;  %v1382_v53 = vpop.f32.mrb[3].mxu1  ;;  %v395_v57 = vadd.f32 %v1032_v50, %v1373_v44  ;;  %v640_v60 = vmax.f32 %v392_v54, 0.0 }
  0xf9   :  { %v387_v55 = vadd.f32 %v1373_v44, %v386_v52  ;;  %v638_v56 = vmax.f32 %v384_v49, 0.0 }
  0xfa   :  { %v641_v2 = vmax.f32 %v395_v57, 0.0 }
  0xfb   :  { %v639_v58 = vmax.f32 %v387_v55, 0.0 }
  0xfd   :  { %v702_v61 = vadd.f32 %v639_v58, %v638_v56  ;;  %v1035_v62 = vpop.f32.mrb[4].mxu0  ;;  %v1390_v63 = vpop.f32.mrb[4].mxu1 }
  0xfe   :  { %v399_v0 = vpop.f32.mrb[5].mxu0  ;;  %v1392_v1 = vpop.f32.mrb[5].mxu1  ;;  %v408_v10 = vadd.f32 %v1035_v62, %v1373_v44 }
  0xff   :  { %v703_v3 = vadd.f32 %v702_v61, %v640_v60  ;;  %v400_v4 = vadd.f32 %v1373_v44, %v399_v0  ;;  %v1036_v5 = vpop.f32.mrb[6].mxu0  ;;  %v1396_v6 = vpop.f32.mrb[6].mxu1 }
 0x100   :  { %v402_v8 = vpop.f32.mrb[7].mxu0  ;;  %v1401_v9 = vpop.f32.mrb[7].mxu1  ;;  %v411_v15 = vadd.f32 %v1036_v5, %v1373_v44  ;;  %v644_v18 = vmax.f32 %v408_v10, 0.0 }
 0x101   :  { %v642_v11 = vmax.f32 %v400_v4, 0.0  ;;  %v704_v12 = vadd.f32 %v703_v3, %v641_v2  ;;  %v403_v13 = vadd.f32 %v1373_v44, %v402_v8 }
 0x102   :  { %v645_v24 = vmax.f32 %v411_v15, 0.0 }
 0x103   :  { %v705_v14 = vadd.f32 %v704_v12, %v642_v11  ;;  %v643_v16 = vmax.f32 %v403_v13, 0.0 }
 0x105   :  { %v706_v19 = vadd.f32 %v705_v14, %v643_v16  ;;  %v1039_v20 = vpop.f32.mrb[8].mxu0  ;;  %v1410_v21 = vpop.f32.mrb[8].mxu1 }
 0x106   :  { %v415_v22 = vpop.f32.mrb[9].mxu0  ;;  %v1412_v23 = vpop.f32.mrb[9].mxu1  ;;  %v424_v32 = vadd.f32 %v1039_v20, %v1373_v44 }
 0x107   :  { %v707_v25 = vadd.f32 %v706_v19, %v644_v18  ;;  %v416_v26 = vadd.f32 %v1373_v44, %v415_v22  ;;  %v1040_v27 = vpop.f32.mrb[10].mxu0  ;;  %v1416_v28 = vpop.f32.mrb[10].mxu1 }
 0x108   :  { %v418_v30 = vpop.f32.mrb[11].mxu0  ;;  %v1421_v31 = vpop.f32.mrb[11].mxu1  ;;  %v427_v37 = vadd.f32 %v1040_v27, %v1373_v44  ;;  %v648_v40 = vmax.f32 %v424_v32, 0.0 }
 0x109   :  { %v646_v33 = vmax.f32 %v416_v26, 0.0  ;;  %v708_v34 = vadd.f32 %v707_v25, %v645_v24  ;;  %v419_v35 = vadd.f32 %v1373_v44, %v418_v30 }
 0x10a   :  { %v649_v50 = vmax.f32 %v427_v37, 0.0 }
 0x10b   :  { %v709_v36 = vadd.f32 %v708_v34, %v646_v33  ;;  %v647_v38 = vmax.f32 %v419_v35, 0.0 }
 0x10d   :  { %v710_v42 = vadd.f32 %v709_v36, %v647_v38  ;;  %v1043_v43 = vpop.f32.mrb[12].mxu0  ;;  %v1431_v45 = vpop.f32.mrb[12].mxu1 }
 0x10e   :  { %v431_v47 = vpop.f32.mrb[13].mxu0  ;;  %v1433_v49 = vpop.f32.mrb[13].mxu1  ;;  %v440_v41 = vadd.f32 %v1043_v43, %v1373_v44 }
 0x10f   :  { %v711_v52 = vadd.f32 %v710_v42, %v648_v40  ;;  %v432_v54 = vadd.f32 %v1373_v44, %v431_v47  ;;  %v1044_v55 = vpop.f32.mrb[14].mxu0  ;;  %v1436_v56 = vpop.f32.mrb[14].mxu1 }
 0x110   :  { %v434_v57 = vpop.f32.mrb[15].mxu0  ;;  %v1438_v58 = vpop.f32.mrb[15].mxu1  ;;  %v443_v0 = vadd.f32 %v1044_v55, %v1373_v44  ;;  %v652_v3 = vmax.f32 %v440_v41, 0.0 }
 0x111   :  { %v650_v59 = vmax.f32 %v432_v54, 0.0  ;;  %v712_v60 = vadd.f32 %v711_v52, %v649_v50  ;;  %v435_v61 = vadd.f32 %v1373_v44, %v434_v57 }
 0x112   :  { %v653_v11 = vmax.f32 %v443_v0, 0.0 }
 0x113   :  { %v713_v62 = vadd.f32 %v712_v60, %v650_v59  ;;  %v651_v2 = vmax.f32 %v435_v61, 0.0 }
 0x115   :  { %v714_v4 = vadd.f32 %v713_v62, %v651_v2  ;;  %v1047_v5 = vpop.f32.mrb[16].mxu0  ;;  %v1443_v7 = vpop.f32.mrb[16].mxu1 }
 0x116   :  { %v447_v8 = vpop.f32.mrb[17].mxu0  ;;  %v1445_v10 = vpop.f32.mrb[17].mxu1  ;;  %v456_v18 = vadd.f32 %v1047_v5, %v1373_v44 }
 0x117   :  { %v715_v12 = vadd.f32 %v714_v4, %v652_v3  ;;  %v448_v13 = vadd.f32 %v1373_v44, %v447_v8  ;;  %v1048_v14 = vpop.f32.mrb[18].mxu0  ;;  %v1448_v15 = vpop.f32.mrb[18].mxu1 }
 0x118   :  { %v450_v16 = vpop.f32.mrb[19].mxu0  ;;  %v1450_v17 = vpop.f32.mrb[19].mxu1  ;;  %v459_v25 = vadd.f32 %v1048_v14, %v1373_v44  ;;  %v656_v27 = vmax.f32 %v456_v18, 0.0 }
 0x119   :  { %v654_v19 = vmax.f32 %v448_v13, 0.0  ;;  %v716_v20 = vadd.f32 %v715_v12, %v653_v11  ;;  %v451_v22 = vadd.f32 %v1373_v44, %v450_v16 }
 0x11a   :  { %v657_v35 = vmax.f32 %v459_v25, 0.0 }
 0x11b   :  { %v717_v24 = vadd.f32 %v716_v20, %v654_v19  ;;  %v655_v26 = vmax.f32 %v451_v22, 0.0 }
 0x11d   :  { %v718_v29 = vadd.f32 %v717_v24, %v655_v26  ;;  %v1051_v30 = vpop.f32.mrb[20].mxu0  ;;  %v1455_v32 = vpop.f32.mrb[20].mxu1 }
 0x11e   :  { %v463_v33 = vpop.f32.mrb[21].mxu0  ;;  %v1457_v34 = vpop.f32.mrb[21].mxu1  ;;  %v472_v43 = vadd.f32 %v1051_v30, %v1373_v44 }
 0x11f   :  { %v719_v36 = vadd.f32 %v718_v29, %v656_v27  ;;  %v464_v37 = vadd.f32 %v1373_v44, %v463_v33  ;;  %v1052_v38 = vpop.f32.mrb[22].mxu0  ;;  %v1460_v39 = vpop.f32.mrb[22].mxu1 }
 0x120   :  { %v466_v40 = vpop.f32.mrb[23].mxu0  ;;  %v1462_v42 = vpop.f32.mrb[23].mxu1  ;;  %v475_v55 = vadd.f32 %v1052_v38, %v1373_v44  ;;  %v660_v41 = vmax.f32 %v472_v43, 0.0 }
 0x121   :  { %v658_v47 = vmax.f32 %v464_v37, 0.0  ;;  %v720_v50 = vadd.f32 %v719_v36, %v657_v35  ;;  %v467_v52 = vadd.f32 %v1373_v44, %v466_v40 }
 0x122   :  { %v661_v2 = vmax.f32 %v475_v55, 0.0 }
 0x123   :  { %v721_v54 = vadd.f32 %v720_v50, %v658_v47  ;;  %v659_v57 = vmax.f32 %v467_v52, 0.0 }
 0x125   :  { %v722_v59 = vadd.f32 %v721_v54, %v659_v57  ;;  %v1055_v60 = vpop.f32.mrb[24].mxu0  ;;  %v1467_v61 = vpop.f32.mrb[24].mxu1 }
 0x126   :  { %v479_v62 = vpop.f32.mrb[25].mxu0  ;;  %v1469_v0 = vpop.f32.mrb[25].mxu1  ;;  %v488_v13 = vadd.f32 %v1055_v60, %v1373_v44 }
 0x127   :  { %v723_v3 = vadd.f32 %v722_v59, %v660_v41  ;;  %v480_v4 = vadd.f32 %v1373_v44, %v479_v62  ;;  %v1056_v5 = vpop.f32.mrb[26].mxu0  ;;  %v1472_v8 = vpop.f32.mrb[26].mxu1 }
 0x128   :  { %v482_v11 = vpop.f32.mrb[27].mxu0  ;;  %v1474_v12 = vpop.f32.mrb[27].mxu1  ;;  %v491_v20 = vadd.f32 %v1056_v5, %v1373_v44  ;;  %v664_v24 = vmax.f32 %v488_v13, 0.0 }
 0x129   :  { %v662_v14 = vmax.f32 %v480_v4, 0.0  ;;  %v724_v16 = vadd.f32 %v723_v3, %v661_v2  ;;  %v483_v18 = vadd.f32 %v1373_v44, %v482_v11 }
 0x12a   :  { %v665_v29 = vmax.f32 %v491_v20, 0.0 }
 0x12b   :  { %v725_v19 = vadd.f32 %v724_v16, %v662_v14  ;;  %v663_v22 = vmax.f32 %v483_v18, 0.0  ;;  %v528_v18 = vadd.f32 %v1373_v44, %v1377_v48  ;;  %v544_v48 = vadd.f32 %v1373_v44, %v1392_v1 }
 0x12c   :  { %v560_v1 = vadd.f32 %v1373_v44, %v1412_v23  ;;  %v576_v23 = vadd.f32 %v1373_v44, %v1433_v49  ;;  %v592_v49 = vadd.f32 %v1373_v44, %v1445_v10  ;;  %v608_v10 = vadd.f32 %v1373_v44, %v1457_v34 }
 0x12d   :  { %v726_v25 = vadd.f32 %v725_v19, %v663_v22  ;;  %v1059_v26 = vpop.f32.mrb[28].mxu0  ;;  %v624_v34 = vadd.f32 %v1373_v44, %v1469_v0 }
 0x12e   :  { %v495_v27 = vpop.f32.mrb[29].mxu0  ;;  %v504_v37 = vadd.f32 %v1059_v26, %v1373_v44  ;;  %v531_v26 = vadd.f32 %v1373_v44, %v1382_v53  ;;  %v547_v53 = vadd.f32 %v1373_v44, %v1401_v9  ;;  %v563_v9 = vadd.f32 %v1373_v44, %v1421_v31 }
 0x12f   :  { %v727_v30 = vadd.f32 %v726_v25, %v664_v24  ;;  %v496_v33 = vadd.f32 %v1373_v44, %v495_v27  ;;  %v1060_v35 = vpop.f32.mrb[30].mxu0  ;;  %v674_v25 = vmax.f32 %v528_v18, 0.0  ;;  %v536_v27 = vadd.f32 %v1375_v46, %v1373_v44 }
 0x130   :  { %v498_v36 = vpop.f32.mrb[31].mxu0  ;;  %v507_v50 = vadd.f32 %v1060_v35, %v1373_v44  ;;  %v668_v54 = vmax.f32 %v504_v37, 0.0  ;;  %v675_v35 = vmax.f32 %v531_v26, 0.0  ;;  %v552_v46 = vadd.f32 %v1390_v63, %v1373_v44 }
 0x131   :  { %v666_v38 = vmax.f32 %v496_v33, 0.0  ;;  %v728_v40 = vadd.f32 %v727_v30, %v665_v29  ;;  %v499_v43 = vadd.f32 %v1373_v44, %v498_v36  ;;  %v539_v33 = vadd.f32 %v1380_v51, %v1373_v44 }
 0x132   :  { %v669_v59 = vmax.f32 %v507_v50, 0.0  ;;  %v676_v36 = vmax.f32 %v536_v27, 0.0  ;;  %v555_v51 = vadd.f32 %v1396_v6, %v1373_v44  ;;  %v568_v63 = vadd.f32 %v1410_v21, %v1373_v44 }
 0x133   :  { %v729_v47 = vadd.f32 %v728_v40, %v666_v38  ;;  %v667_v52 = vmax.f32 %v499_v43, 0.0  ;;  %v677_v38 = vmax.f32 %v539_v33, 0.0  ;;  %v678_v43 = vmax.f32 %v544_v48, 0.0 }
 0x134   :  { %v571_v6 = vadd.f32 %v1416_v28, %v1373_v44  ;;  %v579_v31 = vadd.f32 %v1373_v44, %v1438_v58  ;;  %v584_v21 = vadd.f32 %v1431_v45, %v1373_v44  ;;  %v587_v28 = vadd.f32 %v1436_v56, %v1373_v44 }
 0x135   :  { %v730_v55 = vadd.f32 %v729_v47, %v667_v52  ;;  %v1063_v57 = vpop.f32.mrb[32].mxu0  ;;  %v679_v52 = vmax.f32 %v547_v53, 0.0  ;;  %v690_v26 = vmax.f32 %v592_v49, 0.0  ;;  %v595_v58 = vadd.f32 %v1373_v44, %v1450_v17 }
 0x136   :  { %v511_v41 = vpop.f32.mrb[33].mxu0  ;;  %v520_v5 = vadd.f32 %v1063_v57, %v1373_v44  ;;  %v681_v57 = vmax.f32 %v555_v51, 0.0  ;;  %v600_v45 = vadd.f32 %v1443_v7, %v1373_v44  ;;  %v603_v56 = vadd.f32 %v1448_v15, %v1373_v44 }
 0x137   :  { %v731_v60 = vadd.f32 %v730_v55, %v668_v54  ;;  %v512_v62 = vadd.f32 %v1373_v44, %v511_v41  ;;  %v1064_v2 = vpop.f32.mrb[34].mxu0  ;;  %v680_v54 = vmax.f32 %v552_v46, 0.0  ;;  %v611_v17 = vadd.f32 %v1373_v44, %v1462_v42 }
 0x138   :  { %v514_v3 = vpop.f32.mrb[35].mxu0  ;;  %v523_v14 = vadd.f32 %v1064_v2, %v1373_v44  ;;  %v672_v19 = vmax.f32 %v520_v5, 0.0  ;;  %v683_v2 = vmax.f32 %v563_v9, 0.0  ;;  %v692_v33 = vmax.f32 %v600_v45, 0.0 }
 0x139   :  { %v1484_v4 = vadd.f32 %v731_v60, %v669_v59  ;;  %v515_v11 = vadd.f32 %v1373_v44, %v514_v3  ;;  %v670_v13 = vmax.f32 %v512_v62, 0.0  ;;  %v682_v59 = vmax.f32 %v560_v1, 0.0 }
 0x13a   :  { %v673_v22 = vmax.f32 %v523_v14, 0.0  ;;  %v684_v3 = vmax.f32 %v568_v63, 0.0  ;;  %v686_v14 = vmax.f32 %v576_v23, 0.0  ;;  %v693_v48 = vmax.f32 %v603_v56, 0.0 }
 0x13b   :  { %v671_v16 = vmax.f32 %v515_v11, 0.0  ;;  %v685_v11 = vmax.f32 %v571_v6, 0.0  ;;  %v616_v7 = vadd.f32 %v1455_v32, %v1373_v44  ;;  %v733_v15 = vrot.slane %v1484_v4, 4 }
 0x13c   :  { %v695_v53 = vmax.f32 %v611_v17, 0.0  ;;  %v627_v32 = vadd.f32 %v1373_v44, %v1474_v12 }
 0x13d   :  { %v739_v20 = vadd.f32 %v671_v16, %v670_v13  ;;  %v696_v46 = vmax.f32 %v616_v7, 0.0  ;;  %v734_v51 = vadd.f32 %v733_v15, %v1484_v4 }
 0x13e   :  { %v699_v0 = vmax.f32 %v627_v32, 0.0 }
 0x13f   :  { %v740_v24 = vadd.f32 %v739_v20, %v672_v19  ;;  %v687_v19 = vmax.f32 %v579_v31, 0.0  ;;  %v688_v20 = vmax.f32 %v584_v21, 0.0 }
 0x141   :  { %v741_v29 = vadd.f32 %v740_v24, %v673_v22  ;;  %v689_v24 = vmax.f32 %v587_v28, 0.0 }
 0x143   :  { %v742_v30 = vadd.f32 %v741_v29, %v674_v25 }
 0x145   :  { %v743_v37 = vadd.f32 %v742_v30, %v675_v35  ;;  %v691_v30 = vmax.f32 %v595_v58, 0.0 }
 0x147   :  { %v744_v40 = vadd.f32 %v743_v37, %v676_v36  ;;  %v694_v37 = vmax.f32 %v608_v10, 0.0 }
 0x149   :  { %v745_v47 = vadd.f32 %v744_v40, %v677_v38  ;;  %v619_v40 = vadd.f32 %v1460_v39, %v1373_v44  ;;  %v632_v39 = vadd.f32 %v1467_v61, %v1373_v44 }
 0x14b   :  { %v746_v50 = vadd.f32 %v745_v47, %v678_v43 }
 0x14d   :  { %v747_v55 = vadd.f32 %v746_v50, %v679_v52  ;;  %v697_v50 = vmax.f32 %v619_v40, 0.0  ;;  %v698_v52 = vmax.f32 %v624_v34, 0.0 }
 0x14f   :  { %v748_v41 = vadd.f32 %v747_v55, %v680_v54  ;;  %v735_v54 = vrot.slane %v734_v51, 2 }
 0x151   :  { %v749_v60 = vadd.f32 %v748_v41, %v681_v57  ;;  %v635_v57 = vadd.f32 %v1472_v8, %v1373_v44  ;;  %v700_v41 = vmax.f32 %v632_v39, 0.0  ;;  %v736_v9 = vadd.f32 %v735_v54, %v734_v51 }
 0x153   :  { %v750_v62 = vadd.f32 %v749_v60, %v682_v59  ;;  %v701_v63 = vmax.f32 %v635_v57, 0.0 }
 0x155   :  { %v751_v5 = vadd.f32 %v750_v62, %v683_v2  ;;  %v737_v62 = vrot.slane %v736_v9, 1 }
 0x157   :  { %v752_v13 = vadd.f32 %v751_v5, %v684_v3  ;;  %v738_v12 = vadd.f32 %v737_v62, %v736_v9 }
 0x159   :  { %v753_v16 = vadd.f32 %v752_v13, %v685_v11  ;;  %v776_v61 = vmul.f32 0.00390625, %v738_v12 }
 0x15b   :  { %v754_v18 = vadd.f32 %v753_v16, %v686_v14  ;;  %v778_v13 = vpack.c.bf16 %v776_v61, %v776_v61 }
 0x15d   :  { %v755_v22 = vadd.f32 %v754_v18, %v687_v19  ;;  %v805_v44 = vunpack.c.l.b16 %v778_v13  ;;  %v955_v18 = vld [vmem:[%s1566_s4] ss:$0 sm:$0xff] }
 0x15f   :  { %v756_v25 = vadd.f32 %v755_v22, %v688_v20 }
 0x161   :  { %v757_v27 = vadd.f32 %v756_v25, %v689_v24 }
 0x163   :  { %v758_v29 = vadd.f32 %v757_v27, %v690_v26 }
 0x165   :  { %v759_v35 = vadd.f32 %v758_v29, %v691_v30 }
 0x167   :  { %v760_v36 = vadd.f32 %v759_v35, %v692_v33 }
 0x169   :  { %v761_v38 = vadd.f32 %v760_v36, %v693_v48 }
 0x16b   :  { %v762_v43 = vadd.f32 %v761_v38, %v694_v37 }
 0x16d   :  { %v763_v47 = vadd.f32 %v762_v43, %v695_v53 }
 0x16f   :  { %v764_v42 = vadd.f32 %v763_v47, %v696_v46 }
 0x171   :  { %v765_v1 = vadd.f32 %v764_v42, %v697_v50 }
 0x173   :  { %v766_v55 = vadd.f32 %v765_v1, %v698_v52 }
 0x175   :  { %v767_v59 = vadd.f32 %v766_v55, %v699_v0 }
 0x177   :  { %v768_v4 = vadd.f32 %v767_v59, %v700_v41 }
 0x179   :  { %v769_v60 = vadd.f32 %v768_v4, %v701_v63 }
 0x17b   :  { %v770_v6 = vrot.slane %v769_v60, 4 }
 0x17d   :  { %v771_v2 = vadd.f32 %v770_v6, %v769_v60 }
 0x17f   :  { %v772_v23 = vrot.slane %v771_v2, 2 }
 0x181   :  { %v773_v3 = vadd.f32 %v772_v23, %v771_v2 }
 0x183   :  { %v774_v5 = vrot.slane %v773_v3, 1 }
 0x185   :  { %v775_v11 = vadd.f32 %v774_v5, %v773_v3 }
 0x187   :  { %v777_v14 = vmul.f32 0.00390625, %v775_v11 }
 0x189   :  { %v779_v31 = vpack.c.bf16 %v777_v14, %v777_v14 }
 0x18b   :  { %v806_v8 = vunpack.c.l.b16 %v779_v31 }
 0x18d   :  { %v808_v21 = vsel %vm807_vm1, %v806_v8, %v805_v44 }
 0x18e   :  { %v809_v16 = vpack.c.b16 %v808_v21, %v808_v21 }
 0x190   :  { %1110 = vmatmul.mubr.bf16.vlgmr.msra.gmra.mrb[28].mxu1 %v809_v16 }
 0x263   :  { %v893_v28 = vpop.f32.mrb[28].mxu1 }
 0x264   :  { %v894_v19 = vadd.f32 %v955_v18, %v893_v28  ;;  %v1111_v49 = vpop.f32.mrb[29].mxu1 }
 0x265   :  { %v896_v20 = vpop.f32.mrb[30].mxu1 }
 0x266   :  { %899 = vst [vmem:[#allocation2] sm:$0x3] %v894_v19  ;;  %v1112_v22 = vpop.f32.mrb[31].mxu1 }
 0x267   :  { %1191 = shalt.err (!%p1188_p4)
}
 0x268   :  { %s1192_s4 = scalar_lea.hbm %s1567_s5, 32 }
 0x269   :  { %p1193_p5 = scmp.ne.s32.totalorder %s1567_s5, %s1192_s4  ;;  %p1196_p6 = scmp.lt.u32.totalorder %s1192_s4, %s1567_s5 }
 0x26b   :  { %p1198_p7 = pnand %p1196_p6, %p1193_p5 }
 0x26d   :  { %1201 = shalt.err (!%p1198_p7)
}
 0x26e   :  { %909 = dma.vmem_to_hbm [thread:$0]  %s907_s13, 32, %s1567_s5, [#allocation3]  }
 0x26f   :  { %1202 = dma.done.wait [#allocation3], 32  }
 0x270   :  { %1203 = vsyncadd [#allocation3], 4294967264 }
 0x271   :  { %913 = vsyncpa [#allocation3], 1 }

</bundles_post_ra>
